<compile_context>
chip_gen: v6e
topology: v6e:2x2x1
jax: 0.10.0
libtpu: 0.0.40
codegen_flags: <defaults>
</compile_context>

<pallas_src>
import functools
import math

import jax
import jax.numpy as jnp
from jax.experimental import pallas as pl
from jax.experimental.pallas import tpu as pltpu


def _cdiv(a, b):
    return -(-a // b)


def _round_up(a, b):
    return (a + b - 1) // b * b


def _simple_relaxed_loss_kernel(logits_ref, tprob_ref, pred_ref, targ_ref,
                                kl_out_ref, mse_out_ref, kl_acc, mse_acc,
                                *, tile_n, tiles_per_core, n_rows, n_cls,
                                mse_dense, mse_block, n_mse_elems):
    c = pl.program_id(0)                       # core slot ("parallel")
    i = pl.program_id(1)                       # tile within this core ("arbitrary")
    tile_idx = c * tiles_per_core + i          # logical tile (may be past the end)

    @pl.when(i == 0)
    def _():
        kl_acc[...] = jnp.zeros_like(kl_acc)
        mse_acc[...] = jnp.zeros_like(mse_acc)

    # ---------------- KL(target || softmax(logits)): partial sum over tile ----------------
    row0 = tile_idx * tile_n
    rows = row0 + jax.lax.broadcasted_iota(jnp.int32, (tile_n, n_cls), 0)
    valid = rows < n_rows                      # masks ragged tail AND phantom tiles
    logits = jnp.where(valid, logits_ref[...].astype(jnp.float32), 0.0)
    t = jnp.where(valid, tprob_ref[...].astype(jnp.float32), 0.0)

    z = logits - jnp.max(logits, axis=-1, keepdims=True)
    logp = z - jnp.log(jnp.sum(jnp.exp(z), axis=-1, keepdims=True))   # log_softmax
    # PyTorch kl_div: contribution is exactly 0 where target <= 0; safe log avoids
    # -inf/NaN in the unselected branch (grad-safe for a future custom_vjp).
    log_t = jnp.log(jnp.where(t > 0.0, t, 1.0))
    kl_elem = jnp.where(t > 0.0, t * (log_t - logp), 0.0)
    kl_acc[...] += jnp.sum(kl_elem, axis=0, keepdims=True)            # (1, C)

    # ---------------- MSE: partial sum over tile ----------------
    p = pred_ref[...].astype(jnp.float32)
    q = targ_ref[...].astype(jnp.float32)
    if mse_dense:
        r_mse, lanes = mse_block
        base = tile_idx * (r_mse * lanes)
        flat = (base
                + jax.lax.broadcasted_iota(jnp.int32, (r_mse, lanes), 0) * lanes
                + jax.lax.broadcasted_iota(jnp.int32, (r_mse, lanes), 1))
        mvalid = flat < n_mse_elems
    else:
        r_mse, d_cols = mse_block
        mrows = row0 + jax.lax.broadcasted_iota(jnp.int32, (r_mse, d_cols), 0)
        mvalid = mrows < n_rows
    d = jnp.where(mvalid, p - q, 0.0)
    mse_acc[...] += jnp.sum(d * d, axis=0, keepdims=True)             # (1, lanes) / (1, D)

    # ---------------- per-core finalize: raw sums (scaling done in the wrapper) ----------------
    @pl.when(i == pl.num_programs(1) - 1)
    def _():
        kl_out_ref[...] = jnp.sum(kl_acc[...], axis=1, keepdims=True).reshape(1, 1, 1)
        mse_out_ref[...] = jnp.sum(mse_acc[...], axis=1, keepdims=True).reshape(1, 1, 1)


def simple_relaxed_loss(alpha, logits, target_probs, pred, target, *, tile_n=None):
    """loss = KLDiv(log_softmax(logits), target_probs) + alpha * MSE(pred, target).

    logits, target_probs: (N, C); pred, target: (N, D). Inputs are streamed in their
    native dtype; alpha may be a python float or a traced scalar.
    """
    N, C = logits.shape
    N2, D = pred.shape
    assert N2 == N and target_probs.shape == (N, C) and target.shape == (N, D)

    itemsize = max(jnp.dtype(a.dtype).itemsize
                   for a in (logits, target_probs, pred, target))
    sub = 32 // itemsize            # sublane multiple: 8 (f32), 16 (bf16), 32 (8-bit)
    lanes = 128

    # --- decide whether the MSE stream can be viewed lane-densely ((N*D/128, 128)) ---
    mse_dense = (D < lanes) and (D % 8 == 0) and ((N * D) % lanes == 0)
    if mse_dense:
        need = (lanes * sub) // math.gcd(D, lanes * sub)   # tile_n multiple s.t. r_mse % sub == 0
        align = (sub * need) // math.gcd(sub, need)
        if N < align:
            mse_dense = False
    if not mse_dense:
        align = sub

    # --- generation-aware VMEM budget (v7x: 64 MiB physical, v5e/v6e: 128 MiB) ---
    try:
        phys_vmem = int(pltpu.get_tpu_info().vmem_capacity_bytes)
    except Exception:
        phys_vmem = 64 * 1024 * 1024            # conservative (v7x-sized) fallback
    vmem_cap = int(phys_vmem * 0.7)             # ~45 MiB on v7x, ~90 MiB on v5e/v6e

    kl_pad = _round_up(C, lanes)                # C<128 KL blocks are lane-padded in VMEM
    mse_pad = D if mse_dense else _round_up(D, lanes)

    def est_vmem(tn):
        stream = 2 * 2 * tn * (kl_pad + mse_pad) * itemsize     # double-buffered input blocks
        temps = tn * (8 * kl_pad + 4 * mse_pad) * 4             # f32 elementwise temporaries
        return stream + temps + (2 << 20)

    # --- byte-based tile sizing: big enough to amortize per-step overhead, small enough for VMEM ---
    if tile_n is None:
        target_step_bytes = 8 * 1024 * 1024
        tile_n = max(align, target_step_bytes // (2 * (C + D) * itemsize))
    tile_n = _round_up(max(int(tile_n), align), align)
    tile_n = min(tile_n, max(align, (N // align) * align))      # first block stays inside the array
    while est_vmem(tile_n) > vmem_cap and tile_n > align:
        tile_n = max(align, (tile_n // 2) // align * align)

    total_tiles = _cdiv(N, tile_n)
    num_cores = 2                                # megacore split; serialized (harmless) on 1-TC chips
    tiles_per_core = _cdiv(total_tiles, num_cores)

    if mse_dense:
        r_mse = (tile_n * D) // lanes
        mse_rows_total = (N * D) // lanes
        pred_v = pred.reshape(mse_rows_total, lanes)             # free view of contiguous data
        targ_v = target.reshape(mse_rows_total, lanes)
        mse_block = (r_mse, lanes)
        acc_w = lanes
    else:
        pred_v, targ_v = pred, target
        mse_block = (tile_n, D)
        acc_w = D

    def tile_map(c, i):
        # Clamp phantom tiles (when total_tiles is not a multiple of num_cores) to a
        # valid block; their contribution is zeroed in-kernel by the row/flat masks.
        t = jnp.minimum(c * tiles_per_core + i, total_tiles - 1)
        return (t, 0)

    kernel = functools.partial(
        _simple_relaxed_loss_kernel,
        tile_n=tile_n, tiles_per_core=tiles_per_core,
        n_rows=N, n_cls=C, mse_dense=mse_dense, mse_block=mse_block,
        n_mse_elems=N * D)

    cost = pl.CostEstimate(
        flops=N * (6 * C + 3 * D),
        transcendentals=2 * N * C,
        bytes_accessed=2 * N * (C + D) * itemsize + 8 * num_cores,
    )

    kl_sums, mse_sums = pl.pallas_call(
        kernel,
        out_shape=(jax.ShapeDtypeStruct((num_cores, 1, 1), jnp.float32),
                   jax.ShapeDtypeStruct((num_cores, 1, 1), jnp.float32)),
        grid_spec=pltpu.PrefetchScalarGridSpec(
            num_scalar_prefetch=0,
            grid=(num_cores, tiles_per_core),
            in_specs=[
                pl.BlockSpec((tile_n, C), tile_map),
                pl.BlockSpec((tile_n, C), tile_map),
                pl.BlockSpec(mse_block, tile_map),
                pl.BlockSpec(mse_block, tile_map),
            ],
            out_specs=[
                pl.BlockSpec((1, 1, 1), lambda c, i: (c, 0, 0)),
                pl.BlockSpec((1, 1, 1), lambda c, i: (c, 0, 0)),
            ],
            scratch_shapes=[pltpu.VMEM((1, C), jnp.float32),
                            pltpu.VMEM((1, acc_w), jnp.float32)],
        ),
        compiler_params=pltpu.CompilerParams(
            dimension_semantics=("parallel", "arbitrary"),
            vmem_limit_bytes=vmem_cap),
        cost_estimate=cost,
    )(logits, target_probs, pred_v, targ_v)

    # Final scaling / alpha-combine on raw sums (a few scalars) in plain JAX so alpha
    # stays dynamic and the kernel never recompiles when alpha changes.
    kl_mean = jnp.sum(kl_sums) / (N * C)        # nn.KLDivLoss() default 'mean' = element mean
    mse_mean = jnp.sum(mse_sums) / (N * D)      # nn.MSELoss()
    return kl_mean + alpha * mse_mean


# ---------------------------- reference & test harness ----------------------------
def _reference_loss(alpha, logits, tprobs, pred, targ):
    logp = jax.nn.log_softmax(logits, axis=-1)
    kl_elem = jnp.where(tprobs > 0, tprobs * (jnp.log(jnp.where(tprobs > 0, tprobs, 1.0)) - logp), 0.0)
    l1 = jnp.mean(kl_elem)                 # KLDivLoss reduction='mean' (element mean)
    l2 = jnp.mean((pred - targ) ** 2)      # MSELoss
    return l1 + alpha * l2


if __name__ == "__main__":
    alpha = 0.5
    N, C, D = 300, 16, 32

    key = jax.random.PRNGKey(0)
    k1, k2, k3, k4, k5 = jax.random.split(key, 5)

    logits = jax.random.normal(k1, (N, C), jnp.float32)

    # Target class distribution for KLDivLoss (probabilities), with some exact zeros
    # to exercise the `target <= 0 -> zero contribution` branch.
    raw = jax.nn.softmax(jax.random.normal(k2, (N, C), jnp.float32), axis=-1)
    keep = (jax.random.uniform(k3, (N, C)) > 0.25).astype(jnp.float32)
    keep = keep.at[:, 0].set(1.0)
    tprobs = raw * keep
    tprobs = tprobs / jnp.sum(tprobs, axis=-1, keepdims=True)

    pred = jax.random.normal(k4, (N, D), jnp.float32)
    targ = pred + 0.1 * jax.random.normal(k5, (N, D), jnp.float32)

    ref = _reference_loss(alpha, logits, tprobs, pred, targ)

    # tile_n=64 -> 5 tiles over N=300: multi-tile streaming, a ragged last tile, and an
    # odd tile count so one core processes a fully-masked phantom tile.
    loss_small = simple_relaxed_loss(alpha, logits, tprobs, pred, targ, tile_n=64)
    loss_small = jax.block_until_ready(loss_small)
    assert jnp.isfinite(loss_small), "loss is not finite"
    assert jnp.allclose(loss_small, ref, rtol=1e-4, atol=1e-5), (float(loss_small), float(ref))

    # Auto (byte-based) tile sizing path.
    loss_auto = simple_relaxed_loss(alpha, logits, tprobs, pred, targ)
    loss_auto = jax.block_until_ready(loss_auto)
    assert jnp.isfinite(loss_auto), "loss is not finite"
    assert jnp.allclose(loss_auto, ref, rtol=1e-4, atol=1e-5), (float(loss_auto), float(ref))

    print("KERNEL_OK")
</pallas_src>

<mosaic_0001>
module attributes {stable_mosaic.version = 11 : i64} {
  func.func @_simple_relaxed_loss_kernel(%arg0: i32, %arg1: i32, %arg2: memref<64x16xf32, #tpu.memory_space<vmem>>, %arg3: memref<64x16xf32, #tpu.memory_space<vmem>>, %arg4: memref<16x128xf32, #tpu.memory_space<vmem>>, %arg5: memref<16x128xf32, #tpu.memory_space<vmem>>, %arg6: memref<1x1x1xf32, #tpu.memory_space<vmem>>, %arg7: memref<1x1x1xf32, #tpu.memory_space<vmem>>, %arg8: memref<1x16xf32, #tpu.memory_space<vmem>>, %arg9: memref<1x128xf32, #tpu.memory_space<vmem>>) attributes {dimension_semantics = [#tpu.dimension_semantics<parallel>, #tpu.dimension_semantics<arbitrary>], iteration_bounds = array<i64: 2, 3>, scalar_prefetch = 0 : i64, scratch_operands = 2 : i64, tpu.core_type = #tpu.core_type<tc>, window_params = [{transform_indices = @transform_0, window_bounds = array<i64: 64, 16>}, {transform_indices = @transform_1, window_bounds = array<i64: 64, 16>}, {transform_indices = @transform_2, window_bounds = array<i64: 16, 128>}, {transform_indices = @transform_3, window_bounds = array<i64: 16, 128>}, {transform_indices = @transform_4, window_bounds = array<i64: 1, 1, 1>}, {transform_indices = @transform_5, window_bounds = array<i64: 1, 1, 1>}]} {
    %c3_i32 = arith.constant 3 : i32
    %0 = arith.muli %arg0, %c3_i32 : i32
    %1 = arith.addi %0, %arg1 : i32
    %c0_i32 = arith.constant 0 : i32
    %2 = arith.cmpi eq, %arg1, %c0_i32 : i32
    %3 = arith.extui %2 : i1 to i32
    %c0_i32_0 = arith.constant 0 : i32
    %4 = arith.cmpi ne, %3, %c0_i32_0 : i32
    scf.if %4 {
      %cst_27 = arith.constant 0.000000e+00 : f32
      %67 = vector.broadcast %cst_27 : f32 to vector<1x16xf32>
      %c0_28 = arith.constant 0 : index
      %c0_29 = arith.constant 0 : index
      %68 = vector.load %arg8[%c0_28, %c0_29] : memref<1x16xf32, #tpu.memory_space<vmem>>, vector<1x16xf32>
      tpu.vector_store %arg8[%c0_28, %c0_29], %67 {strides = array<i32>} : memref<1x16xf32, #tpu.memory_space<vmem>>, vector<1x16xf32>,
      %cst_30 = arith.constant 0.000000e+00 : f32
      %69 = vector.broadcast %cst_30 : f32 to vector<1x128xf32>
      %c0_31 = arith.constant 0 : index
      %c0_32 = arith.constant 0 : index
      %70 = vector.load %arg9[%c0_31, %c0_32] : memref<1x128xf32, #tpu.memory_space<vmem>>, vector<1x128xf32>
      tpu.vector_store %arg9[%c0_31, %c0_32], %69 {strides = array<i32>} : memref<1x128xf32, #tpu.memory_space<vmem>>, vector<1x128xf32>,
    } else {
    }
    %c64_i32 = arith.constant 64 : i32
    %5 = arith.muli %1, %c64_i32 : i32
    %6 = tpu.iota {dimensions = array<i32: 0>} : vector<64x16xi32>
    %7 = vector.broadcast %5 : i32 to vector<64x16xi32>
    %8 = arith.addi %7, %6 : vector<64x16xi32>
    %c300_i32 = arith.constant 300 : i32
    %9 = vector.broadcast %c300_i32 : i32 to vector<64x16xi32>
    %10 = arith.cmpi slt, %8, %9 : vector<64x16xi32>
    %c0 = arith.constant 0 : index
    %c0_1 = arith.constant 0 : index
    %11 = vector.load %arg2[%c0, %c0_1] : memref<64x16xf32, #tpu.memory_space<vmem>>, vector<64x16xf32>
    %cst = arith.constant 0.000000e+00 : f32
    %12 = vector.broadcast %cst : f32 to vector<64x16xf32>
    %13 = arith.select %10, %11, %12 : vector<64x16xi1>, vector<64x16xf32>
    %c0_2 = arith.constant 0 : index
    %c0_3 = arith.constant 0 : index
    %14 = vector.load %arg3[%c0_2, %c0_3] : memref<64x16xf32, #tpu.memory_space<vmem>>, vector<64x16xf32>
    %cst_4 = arith.constant 0.000000e+00 : f32
    %15 = vector.broadcast %cst_4 : f32 to vector<64x16xf32>
    %16 = arith.select %10, %14, %15 : vector<64x16xi1>, vector<64x16xf32>
    %cst_5 = arith.constant dense<0xFF800000> : vector<64xf32>
    %17 = vector.multi_reduction <maximumf>, %13, %cst_5 [1] : vector<64x16xf32> to vector<64xf32>
    %18 = vector.shape_cast %17 : vector<64xf32> to vector<64x1xf32>
    %19 = vector.broadcast %18 : vector<64x1xf32> to vector<64x16xf32>
    %20 = arith.subf %13, %19 : vector<64x16xf32>
    %21 = math.exp %20 : vector<64x16xf32>
    %cst_6 = arith.constant dense<0.000000e+00> : vector<64xf32>
    %22 = vector.multi_reduction <add>, %21, %cst_6 [1] : vector<64x16xf32> to vector<64xf32>
    %23 = vector.shape_cast %22 : vector<64xf32> to vector<64x1xf32>
    %24 = math.log %23 : vector<64x1xf32>
    %25 = vector.broadcast %24 : vector<64x1xf32> to vector<64x16xf32>
    %26 = arith.subf %20, %25 : vector<64x16xf32>
    %cst_7 = arith.constant 0.000000e+00 : f32
    %27 = vector.broadcast %cst_7 : f32 to vector<64x16xf32>
    %28 = arith.cmpf ogt, %16, %27 : vector<64x16xf32>
    %cst_8 = arith.constant 1.000000e+00 : f32
    %29 = vector.broadcast %cst_8 : f32 to vector<64x16xf32>
    %30 = arith.select %28, %16, %29 : vector<64x16xi1>, vector<64x16xf32>
    %31 = math.log %30 : vector<64x16xf32>
    %cst_9 = arith.constant 0.000000e+00 : f32
    %32 = vector.broadcast %cst_9 : f32 to vector<64x16xf32>
    %33 = arith.cmpf ogt, %16, %32 : vector<64x16xf32>
    %34 = arith.subf %31, %26 : vector<64x16xf32>
    %35 = arith.mulf %16, %34 : vector<64x16xf32>
    %cst_10 = arith.constant 0.000000e+00 : f32
    %36 = vector.broadcast %cst_10 : f32 to vector<64x16xf32>
    %37 = arith.select %33, %35, %36 : vector<64x16xi1>, vector<64x16xf32>
    %c0_11 = arith.constant 0 : index
    %c0_12 = arith.constant 0 : index
    %38 = vector.load %arg8[%c0_11, %c0_12] : memref<1x16xf32, #tpu.memory_space<vmem>>, vector<1x16xf32>
    %cst_13 = arith.constant dense<0.000000e+00> : vector<16xf32>
    %39 = vector.multi_reduction <add>, %37, %cst_13 [0] : vector<64x16xf32> to vector<16xf32>
    %40 = vector.shape_cast %39 : vector<16xf32> to vector<1x16xf32>
    %41 = arith.addf %38, %40 : vector<1x16xf32>
    %c0_14 = arith.constant 0 : index
    %c0_15 = arith.constant 0 : index
    %42 = vector.load %arg8[%c0_14, %c0_15] : memref<1x16xf32, #tpu.memory_space<vmem>>, vector<1x16xf32>
    tpu.vector_store %arg8[%c0_14, %c0_15], %41 {strides = array<i32>} : memref<1x16xf32, #tpu.memory_space<vmem>>, vector<1x16xf32>,
    %c0_16 = arith.constant 0 : index
    %c0_17 = arith.constant 0 : index
    %43 = vector.load %arg4[%c0_16, %c0_17] : memref<16x128xf32, #tpu.memory_space<vmem>>, vector<16x128xf32>
    %c0_18 = arith.constant 0 : index
    %c0_19 = arith.constant 0 : index
    %44 = vector.load %arg5[%c0_18, %c0_19] : memref<16x128xf32, #tpu.memory_space<vmem>>, vector<16x128xf32>
    %c2048_i32 = arith.constant 2048 : i32
    %45 = arith.muli %1, %c2048_i32 : i32
    %46 = tpu.iota {dimensions = array<i32: 0>} : vector<16x128xi32>
    %c128_i32 = arith.constant 128 : i32
    %47 = vector.broadcast %c128_i32 : i32 to vector<16x128xi32>
    %48 = arith.muli %46, %47 : vector<16x128xi32>
    %49 = vector.broadcast %45 : i32 to vector<16x128xi32>
    %50 = arith.addi %49, %48 : vector<16x128xi32>
    %51 = tpu.iota {dimensions = array<i32: 1>} : vector<16x128xi32>
    %52 = arith.addi %50, %51 : vector<16x128xi32>
    %c9600_i32 = arith.constant 9600 : i32
    %53 = vector.broadcast %c9600_i32 : i32 to vector<16x128xi32>
    %54 = arith.cmpi slt, %52, %53 : vector<16x128xi32>
    %55 = arith.subf %43, %44 : vector<16x128xf32>
    %cst_20 = arith.constant 0.000000e+00 : f32
    %56 = vector.broadcast %cst_20 : f32 to vector<16x128xf32>
    %57 = arith.select %54, %55, %56 : vector<16x128xi1>, vector<16x128xf32>
    %c0_21 = arith.constant 0 : index
    %c0_22 = arith.constant 0 : index
    %58 = vector.load %arg9[%c0_21, %c0_22] : memref<1x128xf32, #tpu.memory_space<vmem>>, vector<1x128xf32>
    %59 = arith.mulf %57, %57 : vector<16x128xf32>
    %cst_23 = arith.constant dense<0.000000e+00> : vector<128xf32>
    %60 = vector.multi_reduction <add>, %59, %cst_23 [0] : vector<16x128xf32> to vector<128xf32>
    %61 = vector.shape_cast %60 : vector<128xf32> to vector<1x128xf32>
    %62 = arith.addf %58, %61 : vector<1x128xf32>
    %c0_24 = arith.constant 0 : index
    %c0_25 = arith.constant 0 : index
    %63 = vector.load %arg9[%c0_24, %c0_25] : memref<1x128xf32, #tpu.memory_space<vmem>>, vector<1x128xf32>
    tpu.vector_store %arg9[%c0_24, %c0_25], %62 {strides = array<i32>} : memref<1x128xf32, #tpu.memory_space<vmem>>, vector<1x128xf32>,
    %c2_i32 = arith.constant 2 : i32
    %64 = arith.cmpi eq, %arg1, %c2_i32 : i32
    %65 = arith.extui %64 : i1 to i32
    %c0_i32_26 = arith.constant 0 : i32
    %66 = arith.cmpi ne, %65, %c0_i32_26 : i32
    scf.if %66 {
      %c0_27 = arith.constant 0 : index
      %c0_28 = arith.constant 0 : index
      %67 = vector.load %arg8[%c0_27, %c0_28] : memref<1x16xf32, #tpu.memory_space<vmem>>, vector<1x16xf32>
      %cst_29 = arith.constant dense<0.000000e+00> : vector<1xf32>
      %68 = vector.multi_reduction <add>, %67, %cst_29 [1] : vector<1x16xf32> to vector<1xf32>
      %69 = vector.shape_cast %68 : vector<1xf32> to vector<1x1xf32>
      %70 = vector.shape_cast %69 : vector<1x1xf32> to vector<1x1x1xf32>
      %c0_30 = arith.constant 0 : index
      %c0_31 = arith.constant 0 : index
      %c0_32 = arith.constant 0 : index
      %71 = vector.load %arg6[%c0_30, %c0_31, %c0_32] : memref<1x1x1xf32, #tpu.memory_space<vmem>>, vector<1x1x1xf32>
      tpu.vector_store %arg6[%c0_30, %c0_31, %c0_32], %70 {strides = array<i32>} : memref<1x1x1xf32, #tpu.memory_space<vmem>>, vector<1x1x1xf32>,
      %c0_33 = arith.constant 0 : index
      %c0_34 = arith.constant 0 : index
      %72 = vector.load %arg9[%c0_33, %c0_34] : memref<1x128xf32, #tpu.memory_space<vmem>>, vector<1x128xf32>
      %cst_35 = arith.constant dense<0.000000e+00> : vector<1xf32>
      %73 = vector.multi_reduction <add>, %72, %cst_35 [1] : vector<1x128xf32> to vector<1xf32>
      %74 = vector.shape_cast %73 : vector<1xf32> to vector<1x1xf32>
      %75 = vector.shape_cast %74 : vector<1x1xf32> to vector<1x1x1xf32>
      %c0_36 = arith.constant 0 : index
      %c0_37 = arith.constant 0 : index
      %c0_38 = arith.constant 0 : index
      %76 = vector.load %arg7[%c0_36, %c0_37, %c0_38] : memref<1x1x1xf32, #tpu.memory_space<vmem>>, vector<1x1x1xf32>
      tpu.vector_store %arg7[%c0_36, %c0_37, %c0_38], %75 {strides = array<i32>} : memref<1x1x1xf32, #tpu.memory_space<vmem>>, vector<1x1x1xf32>,
    } else {
    }
    return
  }
  func.func @transform_0(%arg0: i32, %arg1: i32) -> (i32, i32) {
    %c3_i32 = arith.constant 3 : i32
    %0 = arith.muli %arg0, %c3_i32 : i32
    %1 = arith.addi %0, %arg1 : i32
    %c4_i32 = arith.constant 4 : i32
    %2 = arith.minsi %1, %c4_i32 : i32
    %c0_i32 = arith.constant 0 : i32
    %c0_i32_0 = arith.constant 0 : i32
    return %2, %c0_i32 : i32, i32
  }
  func.func @transform_1(%arg0: i32, %arg1: i32) -> (i32, i32) {
    %c3_i32 = arith.constant 3 : i32
    %0 = arith.muli %arg0, %c3_i32 : i32
    %1 = arith.addi %0, %arg1 : i32
    %c4_i32 = arith.constant 4 : i32
    %2 = arith.minsi %1, %c4_i32 : i32
    %c0_i32 = arith.constant 0 : i32
    %c0_i32_0 = arith.constant 0 : i32
    return %2, %c0_i32 : i32, i32
  }
  func.func @transform_2(%arg0: i32, %arg1: i32) -> (i32, i32) {
    %c3_i32 = arith.constant 3 : i32
    %0 = arith.muli %arg0, %c3_i32 : i32
    %1 = arith.addi %0, %arg1 : i32
    %c4_i32 = arith.constant 4 : i32
    %2 = arith.minsi %1, %c4_i32 : i32
    %c0_i32 = arith.constant 0 : i32
    %c0_i32_0 = arith.constant 0 : i32
    return %2, %c0_i32 : i32, i32
  }
  func.func @transform_3(%arg0: i32, %arg1: i32) -> (i32, i32) {
    %c3_i32 = arith.constant 3 : i32
    %0 = arith.muli %arg0, %c3_i32 : i32
    %1 = arith.addi %0, %arg1 : i32
    %c4_i32 = arith.constant 4 : i32
    %2 = arith.minsi %1, %c4_i32 : i32
    %c0_i32 = arith.constant 0 : i32
    %c0_i32_0 = arith.constant 0 : i32
    return %2, %c0_i32 : i32, i32
  }
  func.func @transform_4(%arg0: i32, %arg1: i32) -> (i32, i32, i32) {
    %c0_i32 = arith.constant 0 : i32
    %c0_i32_0 = arith.constant 0 : i32
    %c0_i32_1 = arith.constant 0 : i32
    return %arg0, %c0_i32, %c0_i32_0 : i32, i32, i32
  }
  func.func @transform_5(%arg0: i32, %arg1: i32) -> (i32, i32, i32) {
    %c0_i32 = arith.constant 0 : i32
    %c0_i32_0 = arith.constant 0 : i32
    %c0_i32_1 = arith.constant 0 : i32
    return %arg0, %c0_i32, %c0_i32_0 : i32, i32, i32
  }
}

</mosaic_0001>

<bundles_post_ra>
// kernel: tpu_custom_call.1
= control target key start
LH: loop header
LB: loop body
LE: loop exit
PB: predicated region body
PF: predicated region fallthrough
CT: control target
= control target key end

     0   :  { %s1054_s18 = smov 0   ;;  %s1056_s19 = smov 0   ;;  %s1387_s0 = inlined_call_operand.vmem [shape: f32[300,16], index: 0, kind: input, shape index: {}]   ;;  %s1388_s1 = inlined_call_operand.vmem [shape: f32[300,16], index: 1, kind: input, shape index: {}]   ;;  %s1389_s2 = inlined_call_operand.vmem [shape: f32[75,128], index: 2, kind: input, shape index: {}]   ;;  %s1390_s3 = inlined_call_operand.vmem [shape: f32[75,128], index: 3, kind: input, shape index: {}]   ;;  %s1391_s4 = inlined_call_operand.vmem [shape: f32[2,1,1], index: 4, kind: output, shape index: {0}]   ;;  %s1392_s5 = inlined_call_operand.vmem [shape: f32[2,1,1], index: 5, kind: output, shape index: {1}]  }
   0x1   :  { %s1058_s20 = smov 0   ;;  %s1060_s21 = smov 0  }
   0x2   :  { %s1062_s22 = smov 0  }
   0x3 LB: > { %s25_s23 = sadd.s32 1, %s1013_s20  ;;  %s28_s24 = sadd.s32 1, %s1017_s21  ;;  %s1021_s22 = sphi %s1062_s22, %s16_s22   ;;  %s1017_s21 = sphi %s1060_s21, %s1396_s21   ;;  %s1013_s20 = sphi %s1058_s20, %s1395_s20   ;;  %s1009_s19 = sphi %s1056_s19, %s1394_s19   ;;  %s1005_s18 = sphi %s1054_s18, %s1393_s18  }
   0x4   : > { %p26_p0 = scmp.ge.s32.totalorder %s25_s23, 3  ;;  %p879_p1 = scmp.ge.s32.totalorder %s1021_s22, 1 }
   0x5   : > { %p316_p2 = scmp.lt.s32.totalorder %s1021_s22, 7 }
   0x6   : > { %s1398_s23 = smov (%p26_p0, %s25_s23), 0  ;;  %s1400_s24 = smov (!%p26_p0, %s28_s24), %s1017_s21 }
   0x7   : > { %p317_p3 = pnand %p879_p1, %p316_p2  ;;  %p30_p4 = scmp.ge.s32.totalorder %s1400_s24, 2 }
   0x8   : > { %s384_s25 = smul.u32 (!%p317_p3), 3, %s1009_s19  ;;  %p456_p5 = scmp.lt.s32.totalorder (!%p317_p3), %s1009_s19, 1 }
   0x9   : > { %s1402_s24 = smov (%p30_p4, %s1400_s24), 0  ;;  %320 = sbr.rel (%p317_p3) target bundleno = 539 (0x21b), region = 36 }
   0xa   : > { %s1087_s26 = sadd.s32 (!%p317_p3), %s1005_s18, %s384_s25  ;;  %p888_p9 = scmp.ne.s32.totalorder (!%p317_p3), %s1005_s18, 0 }
   0xb   : > { %p386_p6 = scmp.lt.s32.totalorder (!%p317_p3), %s1087_s26, 4 }
   0xe   : > { %s1404_s19 = smov (!%p456_p5, %s1009_s19), 1 }
   0xf   : > { %s387_s27 = scalar_select %p386_p6, %s1087_s26, 4 }
  0x10   : > { %s458_s30 = scalar_lea.vmem %s1391_s4, %s1404_s19  ;;  %s461_s8 = scalar_lea.vmem %s1392_s5, %s1404_s19 }
  0x11   : > { %s880_s9 = sshll.u32 %s387_s27, 3  ;;  %s884_s10 = sshll.u32 %s387_s27, 1 }
  0x12   : > { %p393_p7 = scmp.lt.s32.totalorder %s880_s9, 37  ;;  %p433_p8 = scmp.lt.s32.totalorder %s884_s10, 9 }
  0x13   : > { %467 = sbr.rel (%p888_p9) target bundleno = 26 (0x1a), region = 40 }
  0x14   : > { %s1406_s9 = smov (!%p393_p7, %s880_s9), 37  ;;  %s1408_s10 = smov (!%p433_p8, %s884_s10), 9 }
  0x15   : > { %s881_s11 = sshll.u32 %s1406_s9, 3  ;;  %s885_s25 = sshll.u32 %s1408_s10, 3 }
  0x16   : > { %s1104_s14 = scalar_lea.vmem %s1387_s0, %s881_s11  ;;  %s1109_s17 = scalar_lea.vmem %s1388_s1, %s881_s11 }
  0x17   : > { %s1114_s27 = scalar_lea.vmem %s1389_s2, %s885_s25  ;;  %s1119_s9 = scalar_lea.vmem %s1390_s3, %s885_s25 }
  0x18   : > { %vm468_vm0 = vcmask 122880   ;;  %v1023_v0 = vmov 0.0  }
  0x19   : > { %469 = vst.msk [vmem:[#allocation2] sm:$0x1] %vm468_vm0, %v1023_v0  ;;  %470 = vst [vmem:[#allocation3] sm:$0x1] %v1023_v0 }
  0x1a PF: > { %s889_s10 = sshll.u32 %s1087_s26, 6  ;;  %v472_v1 = vlaneseq  ;;  %s890_s11 = sshll.u32 %s1087_s26, 11  ;;  %v498_v6 = vld [vmem:[%s1104_s14] sm:$0xff]  ;;  %vm530_vm1 = vcmask 130048   ;;  %v500_v12 = vld [vmem:[%s1104_s14 + $0x10] sm:$0xff]  ;;  %v499_v14 = vld [vmem:[%s1104_s14 + $0x8] sm:$0xff] }
  0x1b   : > { %v1124_v2 = vstv %s889_s10  ;;  %v715_v4 = vstv %s890_s11  ;;  %v708_v20 = vld [vmem:[%s1114_s27] sm:$0xff]  ;;  %v709_v25 = vld [vmem:[%s1114_s27 + $0x8] sm:$0xff]  ;;  %p891_p10 = scmp.ne.s32.totalorder %s1005_s18, 2 }
  0x1c   : > { %v1126_v3 = vshrl.u32 %v472_v1, 7  ;;  %v719_v18 = vand.u32 127, %v472_v1  ;;  %v710_v21 = vld [vmem:[%s1119_s9] sm:$0xff]  ;;  %v711_v26 = vld [vmem:[%s1119_s9 + $0x8] sm:$0xff]  ;;  %v501_v28 = vld [vmem:[%s1104_s14 + $0x18] sm:$0xff] }
  0x1d   : > { %v724_v32 = vsub.f32 %v708_v20, %v710_v21  ;;  %v725_v35 = vsub.f32 %v709_v25, %v711_v26  ;;  %v502_v40 = vld [vmem:[%s1104_s14 + $0x20] sm:$0xff]  ;;  %v503_v43 = vld [vmem:[%s1104_s14 + $0x28] sm:$0xff]  ;;  %v504_v56 = vld [vmem:[%s1104_s14 + $0x30] sm:$0xff] }
  0x1e   : > { %v1130_v5 = vadd.s32 %v1124_v2, %v1126_v3  ;;  %v475_v7 = vadd.s32 16, %v1126_v3  ;;  %v474_v8 = vadd.s32 8, %v1126_v3  ;;  %v713_v9 = vmul.u32 128, %v1126_v3  ;;  %v505_v58 = vld [vmem:[%s1104_s14 + $0x38] sm:$0xff] }
  0x1f   : > { %v476_v10 = vadd.s32 24, %v1126_v3  ;;  %v477_v29 = vadd.s32 32, %v1126_v3  ;;  %v478_v33 = vadd.s32 40, %v1126_v3  ;;  %v479_v52 = vadd.s32 48, %v1126_v3 }
  0x20   : > { %vm490_vm2 = vcmp.lt.s32.totalorder %v1130_v5, 300  ;;  %v1139_v11 = vadd.s32 %v1124_v2, %v475_v7  ;;  %v1143_v13 = vadd.s32 %v1124_v2, %v474_v8  ;;  %v714_v16 = vmul.u32 128, %v474_v8 }
  0x21   : > { %v1148_v15 = vsel %vm490_vm2, %v498_v6, 0.0  ;;  %v716_v17 = vadd.s32 %v715_v4, %v713_v9  ;;  %v1157_v22 = vadd.s32 %v1124_v2, %v476_v10  ;;  %v1181_v39 = vadd.s32 %v1124_v2, %v477_v29 }
  0x22   : > { %v531_v19 = vsel %vm530_vm1, %v1148_v15, -inf  ;;  %vm492_vm3 = vcmp.lt.s32.totalorder %v1139_v11, 300  ;;  %vm491_vm4 = vcmp.lt.s32.totalorder %v1143_v13, 300  ;;  %v717_v31 = vadd.s32 %v715_v4, %v714_v16 }
  0x23   : > { %532 = vmax.xlane.f32.xlu0 %v531_v19  ;;  %v1161_v23 = vsel %vm492_vm3, %v500_v12, 0.0  ;;  %v1165_v24 = vsel %vm491_vm4, %v499_v14, 0.0  ;;  %v720_v34 = vadd.s32 %v719_v18, %v716_v17  ;;  %vm493_vm5 = vcmp.lt.s32.totalorder %v1157_v22, 300 }
  0x24   : > { %v537_v27 = vsel %vm530_vm1, %v1161_v23, -inf  ;;  %v534_v30 = vsel %vm530_vm1, %v1165_v24, -inf  ;;  %v721_v36 = vadd.s32 %v719_v18, %v717_v31  ;;  %v509_v37 = vsel %vm493_vm5, %v501_v28, 0.0 }
  0x25   : > { %538 = vmax.xlane.f32.xlu1 %v537_v27  ;;  %vm722_vm6 = vcmp.lt.s32.totalorder %v720_v34, 9600  ;;  %v540_v38 = vsel %vm530_vm1, %v509_v37, -inf  ;;  %v1185_v42 = vadd.s32 %v1124_v2, %v478_v33  ;;  %vm494_vm8 = vcmp.lt.s32.totalorder %v1181_v39, 300 }
  0x26   : > { %vm723_vm7 = vcmp.lt.s32.totalorder %v721_v36, 9600  ;;  %v726_v41 = vsel %vm722_vm6, %v724_v32, 0.0  ;;  %v510_v47 = vsel %vm494_vm8, %v502_v40, 0.0  ;;  %v480_v53 = vadd.s32 56, %v1126_v3  ;;  %v728_v3 = vld [vmem:[#allocation3] sm:$0x1] }
  0x27   : > { %535 = vmax.xlane.f32.xlu0 %v534_v30  ;;  %v727_v44 = vsel %vm723_vm7, %v725_v35, 0.0  ;;  %v729_v45 = vmul.f32 %v726_v41, %v726_v41  ;;  %vm495_vm9 = vcmp.lt.s32.totalorder %v1185_v42, 300  ;;  %v543_v48 = vsel %vm530_vm1, %v510_v47, -inf }
  0x28   : > { %v730_v46 = vmul.f32 %v727_v44, %v727_v44  ;;  %v511_v49 = vsel %vm495_vm9, %v503_v43, 0.0  ;;  %v1199_v55 = vadd.s32 %v1124_v2, %v479_v52  ;;  %v1203_v57 = vadd.s32 %v1124_v2, %v480_v53  ;;  %v514_v52 = vld [vmem:[%s1109_s17] sm:$0xff] }
  0x29   : > { %541 = vmax.xlane.f32.xlu1 %v540_v38  ;;  %v546_v51 = vsel %vm530_vm1, %v511_v49, -inf  ;;  %v1252_v53 = vsel %vm490_vm2, %v514_v52, 0.0 }
  0x2a   : > { %v731_v50 = vadd.f32 %v730_v46, %v729_v45  ;;  %vm496_vm10 = vcmp.lt.s32.totalorder %v1199_v55, 300  ;;  %vm497_vm11 = vcmp.lt.s32.totalorder %v1203_v57, 300  ;;  %vm627_vm12 = vcmp.gt.f32.partialorder %v1252_v53, 0.0 }
  0x2b   : > { %544 = vmax.xlane.f32.xlu0 %v543_v48  ;;  %v512_v61 = vsel %vm496_vm10, %v504_v56, 0.0  ;;  %v513_v62 = vsel %vm497_vm11, %v505_v58, 0.0  ;;  %v516_v56 = vld [vmem:[%s1109_s17 + $0x10] sm:$0xff]  ;;  %v635_v5 = vsel %vm627_vm12, %v1252_v53, 1.0 }
  0x2c   : > { %v732_v54 = vrot.slane %v731_v50, 4  ;;  %v549_v63 = vsel %vm530_vm1, %v512_v61, -inf  ;;  %v552_v1 = vsel %vm530_vm1, %v513_v62, -inf }
  0x2d   : > { %547 = vmax.xlane.f32.xlu1 %v546_v51 }
  0x2e   : > { %v733_v59 = vadd.f32 %v732_v54, %v731_v50  ;;  %v515_v54 = vld [vmem:[%s1109_s17 + $0x8] sm:$0xff] }
  0x2f   : > { %550 = vmax.xlane.f32.xlu0 %v549_v63  ;;  %v1259_v58 = vsel %vm491_vm4, %v515_v54, 0.0  ;;  %v519_v63 = vld [vmem:[%s1109_s17 + $0x28] sm:$0xff] }
  0x30   : > { %v734_v60 = vrot.slane %v733_v59, 2  ;;  %vm628_vm13 = vcmp.gt.f32.partialorder %v1259_v58, 0.0  ;;  %v1291_v22 = vsel %vm495_vm9, %v519_v63, 0.0 }
  0x31   : > { %553 = vmax.xlane.f32.xlu1 %v552_v1  ;;  %v636_v13 = vsel %vm628_vm13, %v1259_v58, 1.0  ;;  %vm632_vm2 = vcmp.gt.f32.partialorder %v1291_v22, 0.0 }
  0x32   : > { %v735_v0 = vadd.f32 %v734_v60, %v733_v59  ;;  %v1263_v59 = vsel %vm492_vm3, %v516_v56, 0.0  ;;  %v517_v60 = vld [vmem:[%s1109_s17 + $0x18] sm:$0xff] }
  0x33   : > { %vm629_vm14 = vcmp.gt.f32.partialorder %v1263_v59, 0.0 }
  0x34   : > { %v736_v2 = vrot.slane %v735_v0, 1  ;;  %v637_v1 = vsel %vm629_vm14, %v1263_v59, 1.0 }
  0x36   : > { %v737_v4 = vadd.f32 %v736_v2, %v735_v0 }
  0x38   : > { %v738_v6 = vadd.f32 %v737_v4, %v728_v3 }
  0x3a   : > { %739 = vst [vmem:[#allocation3] sm:$0x1] %v738_v6  ;;  %v520_v6 = vld [vmem:[%s1109_s17 + $0x30] sm:$0xff] }
  0x3b   : > { %v1304_v42 = vsel %vm496_vm10, %v520_v6, 0.0 }
  0x3c   : > { %vm633_vm3 = vcmp.gt.f32.partialorder %v1304_v42, 0.0 }
  0xac   : > { %v533_v7 = vpop.xlane.xlu0 %532 }
  0xad   : > { %v1215_v8 = vsub.f32 %v1148_v15, %v533_v7  ;;  %v521_v7 = vld [vmem:[%s1109_s17 + $0x38] sm:$0xff] }
  0xae   : > { %v539_v9 = vpop.xlane.xlu1 %538 }
  0xaf   : > { %v563_v10 = vmul.f32 1.442695, %v1215_v8  ;;  %v1219_v12 = vsub.f32 %v1161_v23, %v539_v9 }
  0xb0   : > { %v536_v14 = vpop.xlane.xlu0 %535 }
  0xb1   : > { %935 = vpow2.f32 %v563_v10  ;;  %v567_v16 = vmul.f32 1.442695, %v1219_v12  ;;  %v1223_v17 = vsub.f32 %v1165_v24, %v536_v14  ;;  %v640_v10 = vsel %vm632_vm2, %v1291_v22, 1.0 }
  0xb2   : > { %v542_v18 = vpop.xlane.xlu1 %541  ;;  %v1311_v14 = vsel %vm497_vm11, %v521_v7, 0.0 }
  0xb3   : > { %937 = vpow2.f32 %v567_v16  ;;  %v565_v19 = vmul.f32 1.442695, %v1223_v17  ;;  %v1226_v20 = vsub.f32 %v509_v37, %v542_v18  ;;  %vm634_vm4 = vcmp.gt.f32.partialorder %v1311_v14, 0.0 }
  0xb4   : > { %v545_v21 = vpop.xlane.xlu0 %544  ;;  %v642_v57 = vsel %vm634_vm4, %v1311_v14, 1.0 }
  0xb5   : > { %939 = vpow2.f32 %v565_v19  ;;  %v569_v15 = vmul.f32 1.442695, %v1226_v20  ;;  %v1229_v23 = vsub.f32 %v510_v47, %v545_v21 }
  0xb6   : > { %v548_v25 = vpop.xlane.xlu1 %547 }
  0xb7   : > { %941 = vpow2.f32 %v569_v15  ;;  %v1231_v26 = vsub.f32 %v511_v49, %v548_v25  ;;  %v571_v27 = vmul.f32 1.442695, %v1229_v23  ;;  %v641_v15 = vsel %vm633_vm3, %v1304_v42, 1.0 }
  0xb8   : > { %v551_v29 = vpop.xlane.xlu0 %550 }
  0xb9   : > { %v573_v24 = vmul.f32 1.442695, %v1231_v26  ;;  %943 = vpow2.f32 %v571_v27  ;;  %v1235_v30 = vsub.f32 %v512_v61, %v551_v29  ;;  %v518_v61 = vld [vmem:[%s1109_s17 + $0x20] sm:$0xff] }
  0xba   : > { %v554_v31 = vpop.xlane.xlu1 %553  ;;  %v1278_v11 = vsel %vm494_vm8, %v518_v61, 0.0 }
  0xbb   : > { %945 = vpow2.f32 %v573_v24  ;;  %v1238_v34 = vsub.f32 %v513_v62, %v554_v31  ;;  %v575_v35 = vmul.f32 1.442695, %v1235_v30  ;;  %v1274_v62 = vsel %vm493_vm5, %v517_v60, 0.0 }
  0xbc   : > { %vm630_vm15 = vcmp.gt.f32.partialorder %v1274_v62, 0.0  ;;  %vm631_vm0 = vcmp.gt.f32.partialorder %v1278_v11, 0.0  ;;  %vm706_vm5 = vcmask 122880  }
  0xbd   : > { %v577_v38 = vmul.f32 1.442695, %v1238_v34  ;;  %947 = vpow2.f32 %v575_v35  ;;  %v638_v39 = vsel %vm630_vm15, %v1274_v62, 1.0  ;;  %v639_v4 = vsel %vm631_vm0, %v1278_v11, 1.0 }
  0xbe   : > { %v936_v28 = vpop.eup %935 }
  0xbf   : > { %v579_v32 = vsel %vm530_vm1, %v936_v28, 0.0  ;;  %949 = vpow2.f32 %v577_v38 }
  0xc0   : > { %v938_v33 = vpop.eup %937  ;;  %580 = vadd.xlane.f32.xlu0 %v579_v32  ;;  %951 = vlog2.f32 %v635_v5 }
  0xc1   : > { %v585_v36 = vsel %vm530_vm1, %v938_v33, 0.0 }
  0xc2   : > { %v940_v37 = vpop.eup %939 }
  0xc3   : > { %v582_v40 = vsel %vm530_vm1, %v940_v37, 0.0 }
  0xc4   : > { %v942_v41 = vpop.eup %941  ;;  %586 = vadd.xlane.f32.xlu0 %v585_v36  ;;  %583 = vadd.xlane.f32.xlu1 %v582_v40 }
  0xc5   : > { %v588_v43 = vsel %vm530_vm1, %v942_v41, 0.0 }
  0xc6   : > { %v944_v44 = vpop.eup %943 }
  0xc7   : > { %v591_v46 = vsel %vm530_vm1, %v944_v44, 0.0 }
  0xc8   : > { %589 = vadd.xlane.f32.xlu1 %v588_v43  ;;  %v946_v45 = vpop.eup %945  ;;  %592 = vadd.xlane.f32.xlu0 %v591_v46 }
  0xc9   : > { %v594_v47 = vsel %vm530_vm1, %v946_v45, 0.0 }
  0xca   : > { %v948_v48 = vpop.eup %947 }
  0xcb   : > { %v597_v50 = vsel %vm530_vm1, %v948_v48, 0.0 }
  0xcc   : > { %595 = vadd.xlane.f32.xlu1 %v594_v47  ;;  %v950_v49 = vpop.eup %949  ;;  %598 = vadd.xlane.f32.xlu0 %v597_v50 }
  0xcd   : > { %v600_v51 = vsel %vm530_vm1, %v950_v49, 0.0  ;;  %v952_v18 = vpop.eup %951 }
  0xce   : > { %v644_v21 = vmul.f32 0.6931472, %v952_v18 }
  0xd0   : > { %601 = vadd.xlane.f32.xlu1 %v600_v51 }
 0x149   : > { %v581_v0 = vpop.xlane.xlu0 %580 }
 0x14a   : > { %953 = vlog2.f32 %v581_v0 }
 0x14b   : > { %955 = vlog2.f32 %v636_v13 }
 0x14c   : > { %957 = vlog2.f32 %v637_v1 }
 0x14d   : > { %v584_v2 = vpop.xlane.xlu1 %583  ;;  %v587_v3 = vpop.xlane.xlu0 %586 }
 0x14e   : > { %959 = vlog2.f32 %v584_v2 }
 0x14f   : > { %961 = vlog2.f32 %v587_v3 }
 0x150   : > { %963 = vlog2.f32 %v638_v39 }
 0x151   : > { %965 = vlog2.f32 %v639_v4  ;;  %v590_v9 = vpop.xlane.xlu1 %589  ;;  %v593_v16 = vpop.xlane.xlu0 %592 }
 0x152   : > { %967 = vlog2.f32 %v590_v9 }
 0x153   : > { %969 = vlog2.f32 %v593_v16 }
 0x154   : > { %971 = vlog2.f32 %v640_v10 }
 0x155   : > { %v596_v55 = vpop.xlane.xlu1 %595  ;;  %v599_v31 = vpop.xlane.xlu0 %598 }
 0x156   : > { %973 = vlog2.f32 %v596_v55 }
 0x157   : > { %v954_v19 = vpop.eup %953  ;;  %975 = vlog2.f32 %v641_v15 }
 0x158   : > { %v604_v25 = vmul.f32 0.6931472, %v954_v19  ;;  %v956_v27 = vpop.eup %955  ;;  %977 = vlog2.f32 %v642_v57 }
 0x159   : > { %v958_v24 = vpop.eup %957  ;;  %v646_v33 = vmul.f32 0.6931472, %v956_v27  ;;  %979 = vlog2.f32 %v599_v31  ;;  %v602_v37 = vpop.xlane.xlu1 %601 }
 0x15a   : > { %v619_v28 = vsub.f32 %v1215_v8, %v604_v25  ;;  %v648_v40 = vmul.f32 0.6931472, %v958_v24  ;;  %981 = vlog2.f32 %v602_v37 }
 0x15b   : > { %v960_v29 = vpop.eup %959 }
 0x15c   : > { %v962_v32 = vpop.eup %961  ;;  %v659_v35 = vsub.f32 %v644_v21, %v619_v28  ;;  %v606_v36 = vmul.f32 0.6931472, %v960_v29 }
 0x15d   : > { %v964_v38 = vpop.eup %963  ;;  %v608_v41 = vmul.f32 0.6931472, %v962_v32 }
 0x15e   : > { %v966_v43 = vpop.eup %965  ;;  %v667_v44 = vmul.f32 %v659_v35, %v1252_v53  ;;  %v620_v45 = vsub.f32 %v1223_v17, %v606_v36  ;;  %v650_v47 = vmul.f32 0.6931472, %v964_v38 }
 0x15f   : > { %v968_v46 = vpop.eup %967  ;;  %v621_v8 = vsub.f32 %v1219_v12, %v608_v41  ;;  %v652_v51 = vmul.f32 0.6931472, %v966_v43 }
 0x160   : > { %v660_v48 = vsub.f32 %v646_v33, %v620_v45  ;;  %v610_v49 = vmul.f32 0.6931472, %v968_v46  ;;  %v970_v50 = vpop.eup %969  ;;  %v675_v56 = vsel %vm627_vm12, %v667_v44, 0.0 }
 0x161   : > { %v661_v52 = vsub.f32 %v648_v40, %v621_v8  ;;  %v972_v54 = vpop.eup %971  ;;  %v612_v61 = vmul.f32 0.6931472, %v970_v50  ;;  %v684_v2 = vsel %vm530_vm1, %v675_v56, 0.0 }
 0x162   : > { %v668_v60 = vmul.f32 %v660_v48, %v1259_v58  ;;  %v622_v5 = vsub.f32 %v1226_v20, %v610_v49  ;;  %v654_v39 = vmul.f32 0.6931472, %v972_v54  ;;  %v683_v49 = vld [vmem:[#allocation2] sm:$0x1] }
 0x163   : > { %v974_v13 = vpop.eup %973  ;;  %v669_v17 = vmul.f32 %v661_v52, %v1263_v59  ;;  %v623_v0 = vsub.f32 %v1229_v23, %v612_v61 }
 0x164   : > { %v676_v12 = vsel %vm628_vm13, %v668_v60, 0.0  ;;  %v662_v63 = vsub.f32 %v650_v47, %v622_v5  ;;  %v614_v1 = vmul.f32 0.6931472, %v974_v13  ;;  %v976_v7 = vpop.eup %975 }
 0x165   : > { %v685_v53 = vsel %vm530_vm1, %v676_v12, 0.0  ;;  %v677_v3 = vsel %vm629_vm14, %v669_v17, 0.0  ;;  %v663_v6 = vsub.f32 %v652_v51, %v623_v0  ;;  %v978_v10 = vpop.eup %977  ;;  %v656_v25 = vmul.f32 0.6931472, %v976_v7 }
 0x166   : > { %v686_v20 = vadd.f32 %v685_v53, %v684_v2  ;;  %v670_v4 = vmul.f32 %v662_v63, %v1274_v62  ;;  %v687_v58 = vsel %vm530_vm1, %v677_v3, 0.0  ;;  %v624_v9 = vsub.f32 %v1231_v26, %v614_v1  ;;  %v980_v55 = vpop.eup %979 }
 0x167   : > { %v671_v18 = vmul.f32 %v663_v6, %v1278_v11  ;;  %v982_v15 = vpop.eup %981  ;;  %v616_v27 = vmul.f32 0.6931472, %v980_v55  ;;  %v658_v28 = vmul.f32 0.6931472, %v978_v10 }
 0x168   : > { %v688_v23 = vadd.f32 %v687_v58, %v686_v20  ;;  %v678_v16 = vsel %vm630_vm15, %v670_v4, 0.0  ;;  %v664_v19 = vsub.f32 %v654_v39, %v624_v9  ;;  %v618_v62 = vmul.f32 0.6931472, %v982_v15 }
 0x169   : > { %v689_v59 = vsel %vm530_vm1, %v678_v16, 0.0  ;;  %v679_v57 = vsel %vm631_vm0, %v671_v18, 0.0  ;;  %v625_v31 = vsub.f32 %v1235_v30, %v616_v27 }
 0x16a   : > { %v690_v21 = vadd.f32 %v689_v59, %v688_v23  ;;  %v691_v26 = vsel %vm530_vm1, %v679_v57, 0.0  ;;  %v672_v24 = vmul.f32 %v664_v19, %v1291_v22  ;;  %v626_v33 = vsub.f32 %v1238_v34, %v618_v62 }
 0x16b   : > { %v665_v11 = vsub.f32 %v656_v25, %v625_v31 }
 0x16c   : > { %v692_v29 = vadd.f32 %v691_v26, %v690_v21  ;;  %v680_v32 = vsel %vm632_vm2, %v672_v24, 0.0  ;;  %v666_v37 = vsub.f32 %v658_v28, %v626_v33 }
 0x16d   : > { %v693_v35 = vsel %vm530_vm1, %v680_v32, 0.0  ;;  %v673_v38 = vmul.f32 %v665_v11, %v1304_v42 }
 0x16e   : > { %v694_v36 = vadd.f32 %v693_v35, %v692_v29  ;;  %v674_v40 = vmul.f32 %v666_v37, %v1311_v14 }
 0x16f   : > { %v681_v41 = vsel %vm633_vm3, %v673_v38, 0.0 }
 0x170   : > { %v695_v43 = vsel %vm530_vm1, %v681_v41, 0.0  ;;  %v682_v30 = vsel %vm634_vm4, %v674_v40, 0.0 }
 0x171   : > { %v696_v22 = vadd.f32 %v695_v43, %v694_v36  ;;  %v697_v34 = vsel %vm530_vm1, %v682_v30, 0.0 }
 0x173   : > { %v698_v44 = vadd.f32 %v697_v34, %v696_v22 }
 0x175   : > { %v699_v45 = vrot.slane %v698_v44, 4 }
 0x177   : > { %v700_v46 = vadd.f32 %v699_v45, %v698_v44 }
 0x179   : > { %v701_v8 = vrot.slane %v700_v46, 2 }
 0x17b   : > { %v702_v47 = vadd.f32 %v701_v8, %v700_v46 }
 0x17d   : > { %v703_v48 = vrot.slane %v702_v47, 1 }
 0x17f   : > { %v704_v50 = vadd.f32 %v703_v48, %v702_v47  ;;  %743 = sbr.rel (%p891_p10) target bundleno = 539 (0x21b), region = 44 }
 0x181   : > { %v705_v51 = vadd.f32 %v704_v50, %v683_v49 }
 0x183   : > { %707 = vst.msk [vmem:[#allocation2] sm:$0x1] %vm706_vm5, %v705_v51 }
 0x184   : > { %v750_v14 = vld [vmem:[#allocation3] sm:$0x1]  ;;  %vm751_vm6 = vcmask 1040384   ;;  %vm748_vm1 = vcmask 0  }
 0x185   : > { %v752_v54 = vsel %vm751_vm6, %v750_v14, 0.0 }
 0x18a   : > { %v744_v42 = vld [vmem:[#allocation2] sm:$0x1] }
 0x18b   : > { %v745_v52 = vsel %vm706_vm5, %v744_v42, 0.0 }
 0x18c   : > { %746 = vadd.xlane.f32.xlu0 %v745_v52 }
 0x190   : > { %753 = vadd.xlane.f32.xlu0 %v752_v54 }
 0x215   : > { %v747_v56 = vpop.xlane.xlu0 %746 }
 0x216   : > { %749 = vst.msk [vmem:[%s458_s30] sm:$0x1] %vm748_vm1, %v747_v56 }
 0x219   : > { %v754_v60 = vpop.xlane.xlu0 %753 }
 0x21a   : > { %755 = vst.msk [vmem:[%s461_s8] sm:$0x1] %vm748_vm1, %v754_v60 }
 0x21b PF: > { %s16_s22 = sadd.s32 1, %s1021_s22   ;;  %s1393_s18 = smov %s1013_s20 }
 0x21c   : > { %p13_p11 = scmp.ge.s32.totalorder %s16_s22, 8   ;;  %s1394_s19 = smov %s1017_s21 }
 0x21d   : > { %s1395_s20 = smov %s1398_s23  ;;  %s1396_s21 = smov %s1402_s24 }
 0x21e   :  { %15 = sbr.rel (!%p13_p11) target bundleno = 3 (0x3), region = 95 }

</bundles_post_ra>
